<compile_context>
chip_gen: v7x
topology: tpu7x:2x2x1
jax: 0.10.0
libtpu: 0.0.40
codegen_flags: <defaults>
</compile_context>

<pallas_src>
import numpy as np
import jax
import jax.numpy as jnp
from jax import lax
from jax.experimental import pallas as pl
from jax.experimental.pallas import tpu as pltpu


def _conv_rows(pad_ref, m_ref, rows, Hp):
    """sum_dy  pad[:, dy:dy+Hp, :] @ m[dy]  ->  (rows, N) f32 accumulator."""
    K = pad_ref.shape[-1]
    acc = None
    for dy in range(3):                                   # static unroll
        lhs = pad_ref[:, dy:dy + Hp, :].reshape(rows, K)
        part = jnp.dot(lhs, m_ref[dy, :, :], preferred_element_type=jnp.float32)
        acc = part if acc is None else acc + part
    return acc


def _down_kernel(x_ref, m1_ref, b1_ref, m2_ref, b2_ref, out_ref,
                 pad1_ref, pad2_ref):
    # x_ref   : (B, 4, Hp, Wp*Cin) f32   2x2 pool-window parity on axis 1
    # m1_ref  : (3, Wp*Cin,  Wp*Cmid)    block-banded conv1 weights (BN1 folded)
    # b1_ref  : (1, Wp*Cmid)             lane-tiled BN1 bias (f32)
    # m2_ref  : (3, Wp*Cmid, Wp*Cout)    block-banded conv2 weights (BN2 folded)
    # b2_ref  : (1, Wp*Cout)             lane-tiled BN2 bias (f32)
    # out_ref : (B, Hp, Wp*Cout)         lane-dense output block
    # pad1_ref: (B, Hp+2, Wp*Cin)        H-halo scratch for conv1 (dot dtype)
    # pad2_ref: (B, Hp+2, Wp*Cmid)       H-halo scratch for conv2 (dot dtype)
    B, Hp, _ = out_ref.shape
    rows = B * Hp

    # ---- MaxPool2d(2): three dense VPU maxes over lane-packed slabs ---------
    pooled = jnp.maximum(
        jnp.maximum(x_ref[:, 0, :, :], x_ref[:, 1, :, :]),
        jnp.maximum(x_ref[:, 2, :, :], x_ref[:, 3, :, :]))  # (B, Hp, Wp*Cin) f32

    # ---- conv1 + BN1 + ReLU --------------------------------------------------
    # Only the H halo needs zeros (W padding is folded into m1); the two border
    # rows are dense lane stores, re-written every step so the kernel stays
    # correct under megacore ("parallel") grid partitioning.
    z1 = jnp.zeros((B, 1, pad1_ref.shape[-1]), pad1_ref.dtype)
    pad1_ref[:, 0:1, :] = z1
    pad1_ref[:, Hp + 1:Hp + 2, :] = z1
    pad1_ref[:, 1:Hp + 1, :] = pooled.astype(pad1_ref.dtype)

    y1 = _conv_rows(pad1_ref, m1_ref, rows, Hp)            # (rows, Wp*Cmid) f32
    y1 = jnp.maximum(y1 + b1_ref[...], 0.0)

    # ---- conv2 + BN2 + ReLU --------------------------------------------------
    z2 = jnp.zeros((B, 1, pad2_ref.shape[-1]), pad2_ref.dtype)
    pad2_ref[:, 0:1, :] = z2
    pad2_ref[:, Hp + 1:Hp + 2, :] = z2
    pad2_ref[:, 1:Hp + 1, :] = y1.reshape(B, Hp, -1).astype(pad2_ref.dtype)

    y2 = _conv_rows(pad2_ref, m2_ref, rows, Hp)            # (rows, Wp*Cout) f32
    y2 = jnp.maximum(y2 + b2_ref[...], 0.0)

    out_ref[...] = y2.reshape(B, Hp, -1).astype(out_ref.dtype)


def _row_matmul_weights(w_hwio, scale, Wp, dot_dtype):
    """Fold BN scale into the 3x3 HWIO weights and expand each kernel row dy
    into a block-banded (Wp*Ci, Wp*Co) matrix performing the dx taps and the
    'SAME' W-padding of the conv as a single lane-packed matmul."""
    _, _, Ci, Co = w_hwio.shape
    wf = w_hwio.astype(jnp.float32) * scale.reshape(1, 1, 1, Co).astype(jnp.float32)
    sel = np.zeros((3, Wp, Wp), np.float32)        # sel[dx, p, w] = [p == w+dx-1]
    for dx in range(3):
        for w in range(Wp):
            p = w + dx - 1
            if 0 <= p < Wp:
                sel[dx, p, w] = 1.0
    m = jnp.einsum('xpw,yxio->ypiwo', jnp.asarray(sel), wf)   # (3, Wp, Ci, Wp, Co)
    return m.reshape(3, Wp * Ci, Wp * Co).astype(dot_dtype)


def _pick_batch_block(N, Hp, per_batch_bytes, vmem_budget_bytes):
    """Largest divisor of N whose block fits the VMEM budget, stopping as soon
    as the MXU gets >= 512 rows per step (amortizes per-step overhead)."""
    best = 1
    for d in range(1, N + 1):
        if N % d:
            continue
        if d * per_batch_bytes > vmem_budget_bytes:
            break
        best = d
        if d * Hp >= 512:
            break
    # v7x has 2 TensorCores: keep >=2 grid steps when it does not starve rows.
    if N // best < 2 and best % 2 == 0 and (best // 2) * Hp >= 256:
        best //= 2
    return best


def down_forward(x_nchw, w1, bn1_scale, bn1_bias, w2, bn2_scale, bn2_bias,
                 dot_dtype=jnp.bfloat16):
    """Pallas implementation of Down.forward (inference-mode BatchNorm).
    Input/output are NCHW; w1/w2 are HWIO 3x3 conv weights (no conv bias)."""
    N, Cin, H, W = x_nchw.shape
    assert H % 2 == 0 and W % 2 == 0, "MaxPool2d(2) path assumes even H and W"
    Hp, Wp = H // 2, W // 2
    Cmid = w1.shape[-1]
    Cout = w2.shape[-1]
    K1, N1 = Wp * Cin, Wp * Cmid
    K2, N2 = Wp * Cmid, Wp * Cout

    # Single NCHW -> pool-parity-major, lane-packed layout pass.
    x = x_nchw.astype(jnp.float32).reshape(N, Cin, Hp, 2, Wp, 2)
    x = jnp.transpose(x, (0, 3, 5, 2, 4, 1))            # (N, hp, wp, Hp, Wp, Cin)
    x_r = x.reshape(N, 4, Hp, K1)

    m1 = _row_matmul_weights(w1, bn1_scale, Wp, dot_dtype)   # (3, K1, N1)
    m2 = _row_matmul_weights(w2, bn2_scale, Wp, dot_dtype)   # (3, K2, N2)
    b1 = jnp.tile(bn1_bias.astype(jnp.float32), Wp).reshape(1, N1)
    b2 = jnp.tile(bn2_bias.astype(jnp.float32), Wp).reshape(1, N2)

    # Per-generation VMEM budget (v7x only has 64 MiB physical per TC).
    try:
        phys_vmem = int(pltpu.get_tpu_info().vmem_capacity_bytes)
    except Exception:
        phys_vmem = 64 * 1024 * 1024
    vmem_limit = min(phys_vmem * 3 // 4, 100 * 1024 * 1024)

    dsize = jnp.dtype(dot_dtype).itemsize
    per_b = (2 * 4 * Hp * K1 * 4 +            # double-buffered input block (f32)
             2 * Hp * N2 * 4 +                # double-buffered output block (f32)
             (Hp + 2) * (K1 + K2) * dsize +   # H-halo scratches
             3 * Hp * max(K1, N1, N2) * 4)    # live f32 temporaries
    B = _pick_batch_block(N, Hp, per_b, int(vmem_limit * 0.8))

    x_extra = {}
    if N // B >= 4:
        # per-step compute is tiny -> deepen input prefetch
        x_extra = dict(pipeline_mode=pl.Buffered(3))

    out = pl.pallas_call(
        _down_kernel,
        out_shape=jax.ShapeDtypeStruct((N, Hp, N2), jnp.float32),
        grid_spec=pltpu.PrefetchScalarGridSpec(
            num_scalar_prefetch=0,
            grid=(N // B,),
            in_specs=[
                pl.BlockSpec((B, 4, Hp, K1), lambda n: (n, 0, 0, 0), **x_extra),
                pl.BlockSpec((3, K1, N1), lambda n: (0, 0, 0)),
                pl.BlockSpec((1, N1), lambda n: (0, 0)),
                pl.BlockSpec((3, K2, N2), lambda n: (0, 0, 0)),
                pl.BlockSpec((1, N2), lambda n: (0, 0)),
            ],
            out_specs=pl.BlockSpec((B, Hp, N2), lambda n: (n, 0, 0)),
            scratch_shapes=[
                pltpu.VMEM((B, Hp + 2, K1), dot_dtype),
                pltpu.VMEM((B, Hp + 2, K2), dot_dtype),
            ],
        ),
        compiler_params=pltpu.CompilerParams(
            dimension_semantics=("parallel",),
            vmem_limit_bytes=int(vmem_limit),
        ),
    )(x_r, m1, b1, m2, b2)

    # (N, Hp, Wp*Cout) -> NCHW
    return jnp.transpose(out.reshape(N, Hp, Wp, Cout), (0, 3, 1, 2))


def _reference(x_nchw, w1, s1, b1, w2, s2, b2, dot_dtype=jnp.float32):
    """Pure-JAX reference with the same BN fold and (optionally) the same
    low-precision operand rounding as the kernel's dot path."""
    x = jnp.transpose(x_nchw, (0, 2, 3, 1)).astype(jnp.float32)
    pooled = lax.reduce_window(x, -jnp.inf, lax.max,
                               (1, 2, 2, 1), (1, 2, 2, 1), 'VALID')
    dn = ('NHWC', 'HWIO', 'NHWC')
    w1f = (w1.astype(jnp.float32) * s1.reshape(1, 1, 1, -1)).astype(dot_dtype)
    w2f = (w2.astype(jnp.float32) * s2.reshape(1, 1, 1, -1)).astype(dot_dtype)
    y1 = lax.conv_general_dilated(pooled.astype(dot_dtype), w1f, (1, 1), 'SAME',
                                  dimension_numbers=dn,
                                  preferred_element_type=jnp.float32)
    y1 = jnp.maximum(y1 + b1.reshape(1, 1, 1, -1), 0.0)
    y2 = lax.conv_general_dilated(y1.astype(dot_dtype), w2f, (1, 1), 'SAME',
                                  dimension_numbers=dn,
                                  preferred_element_type=jnp.float32)
    y2 = jnp.maximum(y2 + b2.reshape(1, 1, 1, -1), 0.0)
    return jnp.transpose(y2, (0, 3, 1, 2))


if __name__ == "__main__":
    N, Cin, H, W = 2, 4, 16, 16
    Cout = 8
    Cmid = Cout
    eps = 1e-5

    key = jax.random.PRNGKey(0)
    k = jax.random.split(key, 11)

    x = jax.random.normal(k[0], (N, Cin, H, W), jnp.float32)

    # conv weights (HWIO), no bias
    w1 = jax.random.normal(k[1], (3, 3, Cin, Cmid), jnp.float32) * (2.0 / (9 * Cin)) ** 0.5
    w2 = jax.random.normal(k[2], (3, 3, Cmid, Cout), jnp.float32) * (2.0 / (9 * Cmid)) ** 0.5

    # BatchNorm parameters / running stats, folded into scale & bias
    g1 = jax.random.uniform(k[3], (Cmid,), jnp.float32, 0.5, 1.5)
    be1 = jax.random.normal(k[4], (Cmid,), jnp.float32) * 0.1
    mu1 = jax.random.normal(k[5], (Cmid,), jnp.float32) * 0.1
    v1 = jax.random.uniform(k[6], (Cmid,), jnp.float32, 0.5, 1.5)
    g2 = jax.random.uniform(k[7], (Cout,), jnp.float32, 0.5, 1.5)
    be2 = jax.random.normal(k[8], (Cout,), jnp.float32) * 0.1
    mu2 = jax.random.normal(k[9], (Cout,), jnp.float32) * 0.1
    v2 = jax.random.uniform(k[10], (Cout,), jnp.float32, 0.5, 1.5)

    s1 = g1 / jnp.sqrt(v1 + eps)
    b1 = be1 - mu1 * s1
    s2 = g2 / jnp.sqrt(v2 + eps)
    b2 = be2 - mu2 * s2

    # --- exact f32 path: must match the pure-JAX reference tightly -----------
    out_f32 = down_forward(x, w1, s1, b1, w2, s2, b2, dot_dtype=jnp.float32)
    out_f32 = jax.block_until_ready(out_f32)
    ref_f32 = _reference(x, w1, s1, b1, w2, s2, b2, dot_dtype=jnp.float32)
    assert out_f32.shape == (N, Cout, H // 2, W // 2)
    assert jnp.allclose(out_f32, ref_f32, atol=2e-4, rtol=2e-4)

    # --- default path (bf16 MXU operands, f32 accumulation) vs a reference
    #     with the same operand rounding -------------------------------------
    out_bf = down_forward(x, w1, s1, b1, w2, s2, b2)
    out_bf = jax.block_until_ready(out_bf)
    ref_bf = _reference(x, w1, s1, b1, w2, s2, b2, dot_dtype=jnp.bfloat16)
    assert jnp.allclose(out_bf, ref_bf, atol=2e-2, rtol=2e-2)

    print("KERNEL_OK")
</pallas_src>

<mosaic_0001>
module attributes {stable_mosaic.version = 11 : i64} {
  func.func @_down_kernel(%arg0: i32, %arg1: memref<2x4x8x32xf32, #tpu.memory_space<vmem>>, %arg2: memref<3x32x64xf32, #tpu.memory_space<vmem>>, %arg3: memref<1x64xf32, #tpu.memory_space<vmem>>, %arg4: memref<3x64x64xf32, #tpu.memory_space<vmem>>, %arg5: memref<1x64xf32, #tpu.memory_space<vmem>>, %arg6: memref<2x8x64xf32, #tpu.memory_space<vmem>>, %arg7: memref<2x10x32xf32, #tpu.memory_space<vmem>>, %arg8: memref<2x10x64xf32, #tpu.memory_space<vmem>>) attributes {dimension_semantics = [#tpu.dimension_semantics<parallel>], iteration_bounds = array<i64: 1>, scalar_prefetch = 0 : i64, scratch_operands = 2 : i64, tpu.core_type = #tpu.core_type<tc>, window_params = [{transform_indices = @transform_0, window_bounds = array<i64: 2, 4, 8, 32>}, {pipeline_mode = #tpu.pipeline_mode<synchronous>, transform_indices = @transform_1, window_bounds = array<i64: 3, 32, 64>}, {pipeline_mode = #tpu.pipeline_mode<synchronous>, transform_indices = @transform_2, window_bounds = array<i64: 1, 64>}, {pipeline_mode = #tpu.pipeline_mode<synchronous>, transform_indices = @transform_3, window_bounds = array<i64: 3, 64, 64>}, {pipeline_mode = #tpu.pipeline_mode<synchronous>, transform_indices = @transform_4, window_bounds = array<i64: 1, 64>}, {transform_indices = @transform_5, window_bounds = array<i64: 2, 8, 64>}]} {
    %c0 = arith.constant 0 : index
    %c0_0 = arith.constant 0 : index
    %c0_1 = arith.constant 0 : index
    %c0_2 = arith.constant 0 : index
    %0 = vector.load %arg1[%c0, %c0_0, %c0_1, %c0_2] : memref<2x4x8x32xf32, #tpu.memory_space<vmem>>, vector<2x1x8x32xf32>
    %1 = vector.shape_cast %0 : vector<2x1x8x32xf32> to vector<2x8x32xf32>
    %c0_3 = arith.constant 0 : index
    %c1 = arith.constant 1 : index
    %c0_4 = arith.constant 0 : index
    %c0_5 = arith.constant 0 : index
    %2 = vector.load %arg1[%c0_3, %c1, %c0_4, %c0_5] : memref<2x4x8x32xf32, #tpu.memory_space<vmem>>, vector<2x1x8x32xf32>
    %3 = vector.shape_cast %2 : vector<2x1x8x32xf32> to vector<2x8x32xf32>
    %4 = arith.maximumf %1, %3 : vector<2x8x32xf32>
    %c0_6 = arith.constant 0 : index
    %c2 = arith.constant 2 : index
    %c0_7 = arith.constant 0 : index
    %c0_8 = arith.constant 0 : index
    %5 = vector.load %arg1[%c0_6, %c2, %c0_7, %c0_8] : memref<2x4x8x32xf32, #tpu.memory_space<vmem>>, vector<2x1x8x32xf32>
    %6 = vector.shape_cast %5 : vector<2x1x8x32xf32> to vector<2x8x32xf32>
    %c0_9 = arith.constant 0 : index
    %c3 = arith.constant 3 : index
    %c0_10 = arith.constant 0 : index
    %c0_11 = arith.constant 0 : index
    %7 = vector.load %arg1[%c0_9, %c3, %c0_10, %c0_11] : memref<2x4x8x32xf32, #tpu.memory_space<vmem>>, vector<2x1x8x32xf32>
    %8 = vector.shape_cast %7 : vector<2x1x8x32xf32> to vector<2x8x32xf32>
    %9 = arith.maximumf %6, %8 : vector<2x8x32xf32>
    %10 = arith.maximumf %4, %9 : vector<2x8x32xf32>
    %cst = arith.constant 0.000000e+00 : f32
    %11 = vector.broadcast %cst : f32 to vector<2x1x32xf32>
    %c0_12 = arith.constant 0 : index
    %c0_13 = arith.constant 0 : index
    %c0_14 = arith.constant 0 : index
    %12 = vector.load %arg7[%c0_12, %c0_13, %c0_14] : memref<2x10x32xf32, #tpu.memory_space<vmem>>, vector<2x1x32xf32>
    tpu.vector_store %arg7[%c0_12, %c0_13, %c0_14], %11 {strides = array<i32>} : memref<2x10x32xf32, #tpu.memory_space<vmem>>, vector<2x1x32xf32>,
    %c0_15 = arith.constant 0 : index
    %c9 = arith.constant 9 : index
    %c0_16 = arith.constant 0 : index
    %13 = vector.load %arg7[%c0_15, %c9, %c0_16] : memref<2x10x32xf32, #tpu.memory_space<vmem>>, vector<2x1x32xf32>
    tpu.vector_store %arg7[%c0_15, %c9, %c0_16], %11 {strides = array<i32>} : memref<2x10x32xf32, #tpu.memory_space<vmem>>, vector<2x1x32xf32>,
    %c0_17 = arith.constant 0 : index
    %c1_18 = arith.constant 1 : index
    %c0_19 = arith.constant 0 : index
    %14 = vector.load %arg7[%c0_17, %c1_18, %c0_19] : memref<2x10x32xf32, #tpu.memory_space<vmem>>, vector<2x8x32xf32>
    tpu.vector_store %arg7[%c0_17, %c1_18, %c0_19], %10 {strides = array<i32>} : memref<2x10x32xf32, #tpu.memory_space<vmem>>, vector<2x8x32xf32>,
    %c0_20 = arith.constant 0 : index
    %c0_21 = arith.constant 0 : index
    %c0_22 = arith.constant 0 : index
    %15 = vector.load %arg7[%c0_20, %c0_21, %c0_22] : memref<2x10x32xf32, #tpu.memory_space<vmem>>, vector<2x8x32xf32>
    %16 = vector.shape_cast %15 : vector<2x8x32xf32> to vector<16x32xf32>
    %c0_23 = arith.constant 0 : index
    %c0_24 = arith.constant 0 : index
    %c0_25 = arith.constant 0 : index
    %17 = vector.load %arg2[%c0_23, %c0_24, %c0_25] : memref<3x32x64xf32, #tpu.memory_space<vmem>>, vector<1x32x64xf32>
    %18 = vector.shape_cast %17 : vector<1x32x64xf32> to vector<32x64xf32>
    %cst_26 = arith.constant dense<0.000000e+00> : vector<16x64xf32>
    %19 = tpu.matmul %16, %18, %cst_26 {dimension_numbers = #tpu.dot_dimension_numbers<[1], [0], [0], [1], [0, 0, 1, 1], [], []>} : vector<16x32xf32>, vector<32x64xf32>, vector<16x64xf32> -> vector<16x64xf32>
    %c0_27 = arith.constant 0 : index
    %c1_28 = arith.constant 1 : index
    %c0_29 = arith.constant 0 : index
    %20 = vector.load %arg7[%c0_27, %c1_28, %c0_29] : memref<2x10x32xf32, #tpu.memory_space<vmem>>, vector<2x8x32xf32>
    %21 = vector.shape_cast %20 : vector<2x8x32xf32> to vector<16x32xf32>
    %c1_30 = arith.constant 1 : index
    %c0_31 = arith.constant 0 : index
    %c0_32 = arith.constant 0 : index
    %22 = vector.load %arg2[%c1_30, %c0_31, %c0_32] : memref<3x32x64xf32, #tpu.memory_space<vmem>>, vector<1x32x64xf32>
    %23 = vector.shape_cast %22 : vector<1x32x64xf32> to vector<32x64xf32>
    %cst_33 = arith.constant dense<0.000000e+00> : vector<16x64xf32>
    %24 = tpu.matmul %21, %23, %cst_33 {dimension_numbers = #tpu.dot_dimension_numbers<[1], [0], [0], [1], [0, 0, 1, 1], [], []>} : vector<16x32xf32>, vector<32x64xf32>, vector<16x64xf32> -> vector<16x64xf32>
    %25 = arith.addf %19, %24 : vector<16x64xf32>
    %c0_34 = arith.constant 0 : index
    %c2_35 = arith.constant 2 : index
    %c0_36 = arith.constant 0 : index
    %26 = vector.load %arg7[%c0_34, %c2_35, %c0_36] : memref<2x10x32xf32, #tpu.memory_space<vmem>>, vector<2x8x32xf32>
    %27 = vector.shape_cast %26 : vector<2x8x32xf32> to vector<16x32xf32>
    %c2_37 = arith.constant 2 : index
    %c0_38 = arith.constant 0 : index
    %c0_39 = arith.constant 0 : index
    %28 = vector.load %arg2[%c2_37, %c0_38, %c0_39] : memref<3x32x64xf32, #tpu.memory_space<vmem>>, vector<1x32x64xf32>
    %29 = vector.shape_cast %28 : vector<1x32x64xf32> to vector<32x64xf32>
    %cst_40 = arith.constant dense<0.000000e+00> : vector<16x64xf32>
    %30 = tpu.matmul %27, %29, %cst_40 {dimension_numbers = #tpu.dot_dimension_numbers<[1], [0], [0], [1], [0, 0, 1, 1], [], []>} : vector<16x32xf32>, vector<32x64xf32>, vector<16x64xf32> -> vector<16x64xf32>
    %31 = arith.addf %25, %30 : vector<16x64xf32>
    %c0_41 = arith.constant 0 : index
    %c0_42 = arith.constant 0 : index
    %32 = vector.load %arg3[%c0_41, %c0_42] : memref<1x64xf32, #tpu.memory_space<vmem>>, vector<1x64xf32>
    %33 = vector.broadcast %32 : vector<1x64xf32> to vector<16x64xf32>
    %34 = arith.addf %31, %33 : vector<16x64xf32>
    %cst_43 = arith.constant 0.000000e+00 : f32
    %35 = vector.broadcast %cst_43 : f32 to vector<16x64xf32>
    %36 = arith.maximumf %34, %35 : vector<16x64xf32>
    %cst_44 = arith.constant 0.000000e+00 : f32
    %37 = vector.broadcast %cst_44 : f32 to vector<2x1x64xf32>
    %c0_45 = arith.constant 0 : index
    %c0_46 = arith.constant 0 : index
    %c0_47 = arith.constant 0 : index
    %38 = vector.load %arg8[%c0_45, %c0_46, %c0_47] : memref<2x10x64xf32, #tpu.memory_space<vmem>>, vector<2x1x64xf32>
    tpu.vector_store %arg8[%c0_45, %c0_46, %c0_47], %37 {strides = array<i32>} : memref<2x10x64xf32, #tpu.memory_space<vmem>>, vector<2x1x64xf32>,
    %c0_48 = arith.constant 0 : index
    %c9_49 = arith.constant 9 : index
    %c0_50 = arith.constant 0 : index
    %39 = vector.load %arg8[%c0_48, %c9_49, %c0_50] : memref<2x10x64xf32, #tpu.memory_space<vmem>>, vector<2x1x64xf32>
    tpu.vector_store %arg8[%c0_48, %c9_49, %c0_50], %37 {strides = array<i32>} : memref<2x10x64xf32, #tpu.memory_space<vmem>>, vector<2x1x64xf32>,
    %40 = vector.shape_cast %36 : vector<16x64xf32> to vector<2x8x64xf32>
    %c0_51 = arith.constant 0 : index
    %c1_52 = arith.constant 1 : index
    %c0_53 = arith.constant 0 : index
    %41 = vector.load %arg8[%c0_51, %c1_52, %c0_53] : memref<2x10x64xf32, #tpu.memory_space<vmem>>, vector<2x8x64xf32>
    tpu.vector_store %arg8[%c0_51, %c1_52, %c0_53], %40 {strides = array<i32>} : memref<2x10x64xf32, #tpu.memory_space<vmem>>, vector<2x8x64xf32>,
    %c0_54 = arith.constant 0 : index
    %c0_55 = arith.constant 0 : index
    %c0_56 = arith.constant 0 : index
    %42 = vector.load %arg8[%c0_54, %c0_55, %c0_56] : memref<2x10x64xf32, #tpu.memory_space<vmem>>, vector<2x8x64xf32>
    %43 = vector.shape_cast %42 : vector<2x8x64xf32> to vector<16x64xf32>
    %c0_57 = arith.constant 0 : index
    %c0_58 = arith.constant 0 : index
    %c0_59 = arith.constant 0 : index
    %44 = vector.load %arg4[%c0_57, %c0_58, %c0_59] : memref<3x64x64xf32, #tpu.memory_space<vmem>>, vector<1x64x64xf32>
    %45 = vector.shape_cast %44 : vector<1x64x64xf32> to vector<64x64xf32>
    %cst_60 = arith.constant dense<0.000000e+00> : vector<16x64xf32>
    %46 = tpu.matmul %43, %45, %cst_60 {dimension_numbers = #tpu.dot_dimension_numbers<[1], [0], [0], [1], [0, 0, 1, 1], [], []>} : vector<16x64xf32>, vector<64x64xf32>, vector<16x64xf32> -> vector<16x64xf32>
    %c0_61 = arith.constant 0 : index
    %c1_62 = arith.constant 1 : index
    %c0_63 = arith.constant 0 : index
    %47 = vector.load %arg8[%c0_61, %c1_62, %c0_63] : memref<2x10x64xf32, #tpu.memory_space<vmem>>, vector<2x8x64xf32>
    %48 = vector.shape_cast %47 : vector<2x8x64xf32> to vector<16x64xf32>
    %c1_64 = arith.constant 1 : index
    %c0_65 = arith.constant 0 : index
    %c0_66 = arith.constant 0 : index
    %49 = vector.load %arg4[%c1_64, %c0_65, %c0_66] : memref<3x64x64xf32, #tpu.memory_space<vmem>>, vector<1x64x64xf32>
    %50 = vector.shape_cast %49 : vector<1x64x64xf32> to vector<64x64xf32>
    %cst_67 = arith.constant dense<0.000000e+00> : vector<16x64xf32>
    %51 = tpu.matmul %48, %50, %cst_67 {dimension_numbers = #tpu.dot_dimension_numbers<[1], [0], [0], [1], [0, 0, 1, 1], [], []>} : vector<16x64xf32>, vector<64x64xf32>, vector<16x64xf32> -> vector<16x64xf32>
    %52 = arith.addf %46, %51 : vector<16x64xf32>
    %c0_68 = arith.constant 0 : index
    %c2_69 = arith.constant 2 : index
    %c0_70 = arith.constant 0 : index
    %53 = vector.load %arg8[%c0_68, %c2_69, %c0_70] : memref<2x10x64xf32, #tpu.memory_space<vmem>>, vector<2x8x64xf32>
    %54 = vector.shape_cast %53 : vector<2x8x64xf32> to vector<16x64xf32>
    %c2_71 = arith.constant 2 : index
    %c0_72 = arith.constant 0 : index
    %c0_73 = arith.constant 0 : index
    %55 = vector.load %arg4[%c2_71, %c0_72, %c0_73] : memref<3x64x64xf32, #tpu.memory_space<vmem>>, vector<1x64x64xf32>
    %56 = vector.shape_cast %55 : vector<1x64x64xf32> to vector<64x64xf32>
    %cst_74 = arith.constant dense<0.000000e+00> : vector<16x64xf32>
    %57 = tpu.matmul %54, %56, %cst_74 {dimension_numbers = #tpu.dot_dimension_numbers<[1], [0], [0], [1], [0, 0, 1, 1], [], []>} : vector<16x64xf32>, vector<64x64xf32>, vector<16x64xf32> -> vector<16x64xf32>
    %58 = arith.addf %52, %57 : vector<16x64xf32>
    %c0_75 = arith.constant 0 : index
    %c0_76 = arith.constant 0 : index
    %59 = vector.load %arg5[%c0_75, %c0_76] : memref<1x64xf32, #tpu.memory_space<vmem>>, vector<1x64xf32>
    %60 = vector.broadcast %59 : vector<1x64xf32> to vector<16x64xf32>
    %61 = arith.addf %58, %60 : vector<16x64xf32>
    %cst_77 = arith.constant 0.000000e+00 : f32
    %62 = vector.broadcast %cst_77 : f32 to vector<16x64xf32>
    %63 = arith.maximumf %61, %62 : vector<16x64xf32>
    %64 = vector.shape_cast %63 : vector<16x64xf32> to vector<2x8x64xf32>
    %c0_78 = arith.constant 0 : index
    %c0_79 = arith.constant 0 : index
    %c0_80 = arith.constant 0 : index
    %65 = vector.load %arg6[%c0_78, %c0_79, %c0_80] : memref<2x8x64xf32, #tpu.memory_space<vmem>>, vector<2x8x64xf32>
    tpu.vector_store %arg6[%c0_78, %c0_79, %c0_80], %64 {strides = array<i32>} : memref<2x8x64xf32, #tpu.memory_space<vmem>>, vector<2x8x64xf32>,
    return
  }
  func.func @transform_0(%arg0: i32) -> (i32, i32, i32, i32) {
    %c0_i32 = arith.constant 0 : i32
    %c0_i32_0 = arith.constant 0 : i32
    %c0_i32_1 = arith.constant 0 : i32
    %c0_i32_2 = arith.constant 0 : i32
    return %arg0, %c0_i32, %c0_i32_0, %c0_i32_1 : i32, i32, i32, i32
  }
  func.func @transform_1(%arg0: i32) -> (i32, i32, i32) {
    %c0_i32 = arith.constant 0 : i32
    %c0_i32_0 = arith.constant 0 : i32
    %c0_i32_1 = arith.constant 0 : i32
    %c0_i32_2 = arith.constant 0 : i32
    return %c0_i32, %c0_i32_0, %c0_i32_1 : i32, i32, i32
  }
  func.func @transform_2(%arg0: i32) -> (i32, i32) {
    %c0_i32 = arith.constant 0 : i32
    %c0_i32_0 = arith.constant 0 : i32
    %c0_i32_1 = arith.constant 0 : i32
    return %c0_i32, %c0_i32_0 : i32, i32
  }
  func.func @transform_3(%arg0: i32) -> (i32, i32, i32) {
    %c0_i32 = arith.constant 0 : i32
    %c0_i32_0 = arith.constant 0 : i32
    %c0_i32_1 = arith.constant 0 : i32
    %c0_i32_2 = arith.constant 0 : i32
    return %c0_i32, %c0_i32_0, %c0_i32_1 : i32, i32, i32
  }
  func.func @transform_4(%arg0: i32) -> (i32, i32) {
    %c0_i32 = arith.constant 0 : i32
    %c0_i32_0 = arith.constant 0 : i32
    %c0_i32_1 = arith.constant 0 : i32
    return %c0_i32, %c0_i32_0 : i32, i32
  }
  func.func @transform_5(%arg0: i32) -> (i32, i32, i32) {
    %c0_i32 = arith.constant 0 : i32
    %c0_i32_0 = arith.constant 0 : i32
    %c0_i32_1 = arith.constant 0 : i32
    return %arg0, %c0_i32, %c0_i32_0 : i32, i32, i32
  }
}

</mosaic_0001>

<bundles_post_ra>
// kernel: tpu_custom_call.1
= control target key start
LH: loop header
LB: loop body
LE: loop exit
PB: predicated region body
PF: predicated region fallthrough
CT: control target
= control target key end

     0   :  { %10 = vsyncpa [#allocation5], 0  ;;  %s1148_s0 = inlined_call_operand.hbm [shape: f32[2,4,8,32], index: 0, kind: input, shape index: {}]   ;;  %s1149_s1 = inlined_call_operand.hbm [shape: f32[3,32,64], index: 1, kind: input, shape index: {}]   ;;  %s1150_s2 = inlined_call_operand.vmem [shape: f32[1,64], index: 2, kind: input, shape index: {}]   ;;  %s1151_s3 = inlined_call_operand.hbm [shape: f32[3,64,64], index: 3, kind: input, shape index: {}]   ;;  %s1152_s4 = inlined_call_operand.vmem [shape: f32[1,64], index: 4, kind: input, shape index: {}]   ;;  %s1153_s5 = inlined_call_operand.hbm [shape: f32[2,8,64], index: 5, kind: output, shape index: {}]  }
   0x1   :  { %11 = vsyncpa [#allocation8], 0 }
   0x2   :  { %12 = vsyncpa [#allocation6], 0  ;;  %s1012_s18 = smov [#allocation7]   ;;  %s1013_s20 = smov [#allocation4]  }
   0x3   :  { %s30_s19 = sshll.u32 %s1012_s18, 4  ;;  %s18_s21 = sshll.u32 %s1013_s20, 4  ;;  %s31_s19 = int_to_ptr.vmem [resolvable:$true] %s30_s19  ;;  %s1049_s21 = int_to_ptr.vmem [resolvable:$true] %s18_s21 }
   0x4   :  { %s918_s24 = scalar_lea.hbm %s1149_s1, 1536 }
   0x5   :  { %p919_p0 = scmp.ne.s32.totalorder %s1149_s1, %s918_s24  ;;  %p922_p1 = scmp.lt.u32.totalorder %s918_s24, %s1149_s1 }
   0x7   :  { %p924_p2 = pnand %p922_p1, %p919_p0 }
   0x9   :  { %927 = shalt.err (!%p924_p2)
}
   0xa   :  { %s928_s29 = scalar_lea.vmem %s31_s19, 1536  ;;  %p933_p4 = scmp.lt.s32.totalorder %s31_s19, %s31_s19 }
   0xb   :  { %p929_p3 = scmp.ne.s32.totalorder %s31_s19, %s928_s29  ;;  %p934_p5 = scmp.lt.s32.totalorder %s928_s29, %s928_s29 }
   0xd   :  { %p935_p6 = por %p934_p5, %p933_p4 }
   0xf   :  { %p936_p7 = pnand %p935_p6, %p929_p3 }
  0x11   :  { %939 = shalt.err (!%p936_p7)
}
  0x12   :  { %s1014_s30 = smov 128   ;;  %s1015_s6 = smov 8  }
  0x13   :  { %36 = dma.hbm_to_vmem [thread:$0]  %s1149_s1, 1536, %s31_s19, [#allocation8], %s1014_s30, %s1014_s30, %s1015_s6  }
  0x14   :  { %s940_s11 = scalar_lea.hbm %s1148_s0, 1024 }
  0x15   :  { %p941_p8 = scmp.ne.s32.totalorder %s1148_s0, %s940_s11  ;;  %p944_p9 = scmp.lt.u32.totalorder %s940_s11, %s1148_s0 }
  0x17   :  { %p946_p10 = pnand %p944_p9, %p941_p8 }
  0x19   :  { %949 = shalt.err (!%p946_p10)
}
  0x1a   :  { %s950_s16 = scalar_lea.vmem %s1049_s21, 1024  ;;  %p955_p12 = scmp.lt.s32.totalorder %s1049_s21, %s1049_s21 }
  0x1b   :  { %p951_p11 = scmp.ne.s32.totalorder %s1049_s21, %s950_s16  ;;  %p956_p13 = scmp.lt.s32.totalorder %s950_s16, %s950_s16 }
  0x1d   :  { %p957_p0 = por %p956_p13, %p955_p12 }
  0x1f   :  { %p958_p1 = pnand %p957_p0, %p951_p11 }
  0x21   :  { %961 = shalt.err (!%p958_p1)
}
  0x22   :  { %24 = dma.hbm_to_vmem [thread:$0]  %s1148_s0, 1024, %s1049_s21, [#allocation5], %s1014_s30, %s1014_s30, %s1015_s6  }
  0x23   :  { %s1016_s18 = smov [#allocation9]   ;;  %s962_s23 = scalar_lea.hbm %s1151_s3, 3072 }
  0x24   :  { %s44_s19 = sshll.u32 %s1016_s18, 4  ;;  %p963_p2 = scmp.ne.s32.totalorder %s1151_s3, %s962_s23  ;;  %s45_s19 = int_to_ptr.vmem [resolvable:$true] %s44_s19 }
  0x25   :  { %p966_p3 = scmp.lt.u32.totalorder %s962_s23, %s1151_s3 }
  0x27   :  { %p968_p4 = pnand %p966_p3, %p963_p2 }
  0x29   :  { %971 = shalt.err (!%p968_p4)
}
  0x2a   :  { %s972_s28 = scalar_lea.vmem %s45_s19, 3072  ;;  %p977_p6 = scmp.lt.s32.totalorder %s45_s19, %s45_s19 }
  0x2b   :  { %p973_p5 = scmp.ne.s32.totalorder %s45_s19, %s972_s28  ;;  %p978_p7 = scmp.lt.s32.totalorder %s972_s28, %s972_s28 }
  0x2d   :  { %p979_p8 = por %p978_p7, %p977_p6 }
  0x2f   :  { %p980_p9 = pnand %p979_p8, %p973_p5 }
  0x31   :  { %983 = shalt.err (!%p980_p9)
}
  0x32   :  { %50 = dma.hbm_to_vmem [thread:$0]  %s1151_s3, 3072, %s45_s19, [#allocation8], %s1014_s30, %s1014_s30, %s1015_s6  }
  0x33   :  { %1006 = dma.done.wait [#allocation5], 1024  }
  0x34   :  { %1007 = vsyncadd [#allocation5], 4294966272 }
  0x35   :  { %1008 = dma.done.wait [#allocation8], 4608  }
  0x36   :  { %1009 = vsyncadd [#allocation8], 4294962688  ;;  %vm79_vm0 = vcmask 253952   ;;  %v1017_v0 = vmov 0.0   ;;  %v96_v1 = vld [vmem:[#allocation7 + $0x20] sm:$0xff]  ;;  %v97_v2 = vld [vmem:[#allocation7 + $0x28] sm:$0xff] }
  0x37   :  { %80 = vst.msk [vmem:[#allocation2] sm:$0x1] %vm79_vm0, %v1017_v0  ;;  %81 = vst.msk [vmem:[#allocation2 + $0x10] sm:$0x1] %vm79_vm0, %v1017_v0  ;;  %v98_v3 = vld [vmem:[#allocation7 + $0x30] sm:$0xff]  ;;  %v831_v4 = vpack.c.bf16 %v97_v2, %v96_v1  ;;  %v99_v5 = vld [vmem:[#allocation7 + $0x38] sm:$0xff] }
  0x38   :  { %82 = vst.msk [vmem:[#allocation2 + $0x9] sm:$0x1] %vm79_vm0, %v1017_v0  ;;  %83 = vst.msk [vmem:[#allocation2 + $0x19] sm:$0x1] %vm79_vm0, %v1017_v0  ;;  %v62_v6 = vld [vmem:[#allocation4] sm:$0xff]  ;;  %v835_v8 = vpack.c.bf16 %v99_v5, %v98_v3  ;;  %v65_v9 = vld [vmem:[#allocation4 + $0x8] sm:$0xff] }
  0x39   :  { %v63_v7 = vld [vmem:[#allocation4 + $0x20] sm:$0xff]  ;;  %v66_v10 = vld [vmem:[#allocation4 + $0x28] sm:$0xff]  ;;  %v70_v11 = vld [vmem:[#allocation4 + $0x10] sm:$0xff]  ;;  %832 = vmatprep.subr.bf16.mxu0 %v831_v4  ;;  %v67_v12 = vmax.f32 %v62_v6, %v65_v9  ;;  %vm84_vm1 = vcmask 261120   ;;  %vm363_vm2 = vcmask 516096   ;;  %vm368_vm3 = vcmask 523264  }
  0x3a   :  { %v68_v13 = vmax.f32 %v63_v7, %v66_v10  ;;  %v71_v14 = vld [vmem:[#allocation4 + $0x30] sm:$0xff]  ;;  %v73_v15 = vld [vmem:[#allocation4 + $0x18] sm:$0xff]  ;;  %834 = vmatpush3.bf16.msra.mxu0 %v831_v4  ;;  %v89_v19 = vld [vmem:[#allocation7] sm:$0xff]  ;;  %364 = vst.msk [vmem:[#allocation3] sm:$0x1] %vm363_vm2, %v1017_v0  ;;  %s1018_s8 = smov [#allocation10]  }
  0x3b   :  { %v74_v16 = vld [vmem:[#allocation4 + $0x38] sm:$0xff]  ;;  %v75_v17 = vmax.f32 %v70_v11, %v73_v15  ;;  %v90_v20 = vld [vmem:[#allocation7 + $0x8] sm:$0xff]  ;;  %836 = vmatprep.subr.bf16.mxu0 %v835_v8  ;;  %v373_v24 = vld [vmem:[#allocation9] sm:$0xff]  ;;  %365 = vst.msk [vmem:[#allocation3 + $0x10] sm:$0x1] %vm363_vm2, %v1017_v0  ;;  %s666_s9 = sshll.u32 %s1018_s8, 4  ;;  %s667_s9 = int_to_ptr.vmem [resolvable:$true] %s666_s9 }
  0x3c   :  { %v76_v18 = vmax.f32 %v71_v14, %v74_v16  ;;  %v839_v21 = vpack.c.bf16 %v90_v20, %v89_v19  ;;  %v374_v25 = vld [vmem:[#allocation9 + $0x8] sm:$0xff]  ;;  %v91_v27 = vld [vmem:[#allocation7 + $0x10] sm:$0xff]  ;;  %v92_v28 = vld [vmem:[#allocation7 + $0x18] sm:$0xff]  ;;  %366 = vst.msk [vmem:[#allocation3 + $0x9] sm:$0x1] %vm363_vm2, %v1017_v0  ;;  %s984_s10 = scalar_lea.vmem %s667_s9, 256  ;;  %p989_p11 = scmp.lt.s32.totalorder %s667_s9, %s667_s9 }
  0x3d   :  { %v77_v22 = vmax.f32 %v67_v12, %v75_v17  ;;  %v871_v26 = vpack.c.bf16 %v374_v25, %v373_v24  ;;  %v843_v31 = vpack.c.bf16 %v92_v28, %v91_v27  ;;  %v265_v33 = vld [vmem:[#allocation7 + $0x40] sm:$0xff]  ;;  %v266_v34 = vld [vmem:[#allocation7 + $0x48] sm:$0xff]  ;;  %v267_v36 = vld [vmem:[#allocation7 + $0x50] sm:$0xff]  ;;  %367 = vst.msk [vmem:[#allocation3 + $0x19] sm:$0x1] %vm363_vm2, %v1017_v0  ;;  %p985_p10 = scmp.ne.s32.totalorder %s667_s9, %s984_s10  ;;  %p990_p12 = scmp.lt.s32.totalorder %s984_s10, %s984_s10 }
  0x3e   :  { %v78_v23 = vmax.f32 %v68_v13, %v76_v18  ;;  %838 = vmatpush3.bf16.msra.mxu0 %v835_v8  ;;  %v847_v35 = vpack.c.bf16 %v266_v34, %v265_v33  ;;  %v268_v37 = vld [vmem:[#allocation7 + $0x58] sm:$0xff]  ;;  %v384_v41 = vld [vmem:[#allocation9 + $0x40] sm:$0xff]  ;;  %v385_v42 = vld [vmem:[#allocation9 + $0x48] sm:$0xff] }
  0x3f   :  { %85 = vst.msk [vmem:[#allocation2 + $0x1] sm:$0xff] %vm84_vm1, %v77_v22  ;;  %840 = vmatprep.subr.bf16.mxu0 %v839_v21  ;;  %872 = vmatprep.subr.bf16.mxu1 %v871_v26  ;;  %v851_v39 = vpack.c.bf16 %v268_v37, %v267_v36  ;;  %v855_v43 = vpack.c.bf16 %v385_v42, %v384_v41  ;;  %v375_v45 = vld [vmem:[#allocation9 + $0x10] sm:$0xff]  ;;  %v376_v46 = vld [vmem:[#allocation9 + $0x18] sm:$0xff]  ;;  %v377_v51 = vld [vmem:[#allocation9 + $0x20] sm:$0xff]  ;;  %p991_p13 = por %p990_p12, %p989_p11 }
  0x40   :  { %86 = vst.msk [vmem:[#allocation2 + $0x11] sm:$0xff] %vm84_vm1, %v78_v23  ;;  %874 = vmatpush3.bf16.msra.mxu1 %v871_v26  ;;  %v875_v47 = vpack.c.bf16 %v376_v46, %v375_v45  ;;  %v386_v48 = vld [vmem:[#allocation9 + $0x50] sm:$0xff]  ;;  %v387_v49 = vld [vmem:[#allocation9 + $0x58] sm:$0xff]  ;;  %v378_v52 = vld [vmem:[#allocation9 + $0x28] sm:$0xff] }
  0x41   :  { %v859_v50 = vpack.c.bf16 %v387_v49, %v386_v48  ;;  %v879_v53 = vpack.c.bf16 %v378_v52, %v377_v51  ;;  %v388_v54 = vld [vmem:[#allocation9 + $0x60] sm:$0xff]  ;;  %v389_v55 = vld [vmem:[#allocation9 + $0x68] sm:$0xff]  ;;  %v379_v57 = vld [vmem:[#allocation9 + $0x30] sm:$0xff]  ;;  %p992_p0 = pnand %p991_p13, %p985_p10 }
  0x42   :  { %876 = vmatprep.subr.bf16.mxu1 %v875_v47  ;;  %v863_v56 = vpack.c.bf16 %v389_v55, %v388_v54  ;;  %v380_v58 = vld [vmem:[#allocation9 + $0x38] sm:$0xff]  ;;  %v390_v59 = vld [vmem:[#allocation9 + $0x70] sm:$0xff]  ;;  %v557_v63 = vld [vmem:[#allocation9 + $0x80] sm:$0xff] }
  0x43   :  { %v883_v60 = vpack.c.bf16 %v380_v58, %v379_v57  ;;  %v391_v61 = vld [vmem:[#allocation9 + $0x78] sm:$0xff]  ;;  %v558_v1 = vld [vmem:[#allocation9 + $0x88] sm:$0xff]  ;;  %v685_v0 = vld [vmem:[%s1150_s2] ss:$0 sm:$0xff] }
  0x44   :  { %878 = vmatpush3.bf16.msra.mxu1 %v875_v47  ;;  %v867_v62 = vpack.c.bf16 %v391_v61, %v390_v59  ;;  %v887_v2 = vpack.c.bf16 %v558_v1, %v557_v63  ;;  %v559_v9 = vld [vmem:[#allocation9 + $0x90] sm:$0xff]  ;;  %v560_v10 = vld [vmem:[#allocation9 + $0x98] sm:$0xff]  ;;  %v561_v14 = vld [vmem:[#allocation9 + $0xa0] sm:$0xff] }
  0x45   :  { %880 = vmatprep.subr.bf16.mxu1 %v879_v53  ;;  %v891_v13 = vpack.c.bf16 %v560_v10, %v559_v9  ;;  %v562_v17 = vld [vmem:[#allocation9 + $0xa8] sm:$0xff]  ;;  %v563_v20 = vld [vmem:[#allocation9 + $0xb0] sm:$0xff]  ;;  %v692_v27 = vld [vmem:[%s1152_s4] ss:$0 sm:$0xff] }
  0x46   :  { %v93_v29 = vld [vmem:[#allocation2 + $0x1] sm:$0xff]  ;;  %v895_v19 = vpack.c.bf16 %v562_v17, %v561_v14 }
  0x47   :  { %v94_v30 = vld [vmem:[#allocation2 + $0x11] sm:$0xff]  ;;  %v87_v32 = vld [vmem:[#allocation2] sm:$0xff]  ;;  %749 = vmatprep.mubr.msk.f32.mxu0 %vm84_vm1, %v93_v29 }
  0x48   :  { %750 = vmatmul.mubr.msk.f32.vlgmr.msra.gmra.mrb[0].mxu0 %vm84_vm1, %v94_v30  ;;  %v88_v38 = vld [vmem:[#allocation2 + $0x10] sm:$0xff]  ;;  %v262_v40 = vld [vmem:[#allocation2 + $0x2] sm:$0xff]  ;;  %882 = vmatpush3.bf16.msra.mxu1 %v879_v53 }
  0x49   :  { %842 = vmatpush3.bf16.msra.mxu0 %v839_v21  ;;  %760 = vmatprep.mubr.msk.f32.mxu0 %vm84_vm1, %v87_v32  ;;  %v263_v44 = vld [vmem:[#allocation2 + $0x12] sm:$0xff] }
  0x4a   :  { %844 = vmatprep.subr.bf16.mxu0 %v843_v31  ;;  %884 = vmatprep.subr.bf16.mxu1 %v883_v60  ;;  %v564_v21 = vld [vmem:[#allocation9 + $0xb8] sm:$0xff] }
  0x4b   :  { %v899_v22 = vpack.c.bf16 %v564_v21, %v563_v20 }
  0x4c   :  { %886 = vmatpush3.bf16.msra.mxu1 %v883_v60 }
  0x4d   :  { %846 = vmatpush3.bf16.msra.mxu0 %v843_v31  ;;  %888 = vmatprep.subr.bf16.mxu1 %v887_v2 }
  0x4e   :  { %848 = vmatprep.subr.bf16.mxu0 %v847_v35 }
  0x50   :  { %761 = vmatmul.mubr.msk.f32.vlgmr.msra.gmra.mrb[0].mxu0 %vm84_vm1, %v88_v38 }
  0x51   :  { %850 = vmatpush3.bf16.msra.mxu0 %v847_v35  ;;  %771 = vmatprep.mubr.msk.f32.mxu0 %vm84_vm1, %v262_v40 }
  0x52   :  { %852 = vmatprep.subr.bf16.mxu0 %v851_v39 }
  0x55   :  { %854 = vmatpush3.bf16.msra.mxu0 %v851_v39 }
  0x56   :  { %856 = vmatprep.subr.bf16.mxu0 %v855_v43 }
  0x58   :  { %772 = vmatmul.mubr.msk.f32.vlgmr.msra.gmra.mrb[0].mxu0 %vm84_vm1, %v263_v44 }
  0x59   :  { %858 = vmatpush3.bf16.msra.mxu0 %v855_v43 }
  0x5a   :  { %860 = vmatprep.subr.bf16.mxu0 %v859_v50 }
  0x5d   :  { %862 = vmatpush3.bf16.msra.mxu0 %v859_v50 }
  0x5e   :  { %864 = vmatprep.subr.bf16.mxu0 %v863_v56 }
  0x61   :  { %866 = vmatpush3.bf16.msra.mxu0 %v863_v56 }
  0x62   :  { %868 = vmatprep.subr.bf16.mxu0 %v867_v62 }
  0x65   :  { %870 = vmatpush3.bf16.msra.mxu0 %v867_v62 }
 0x12b   :  { %v773_v3 = vpop.f32.mrb[0].mxu0 }
 0x12c   :  { %v360_v4 = vadd.f32 %v773_v3, %v685_v0  ;;  %v341_v5 = vpop.f32.mrb[1].mxu0 }
 0x12d   :  { %v359_v6 = vadd.f32 %v685_v0, %v341_v5 }
 0x12e   :  { %v362_v7 = vmax.f32 %v360_v4, 0.0 }
 0x12f   :  { %v361_v8 = vmax.f32 %v359_v6, 0.0 }
 0x130   :  { %370 = vst.msk [vmem:[#allocation3 + $0x11] sm:$0xff] %vm368_vm3, %v362_v7 }
 0x131   :  { %369 = vst.msk [vmem:[#allocation3 + $0x1] sm:$0xff] %vm368_vm3, %v361_v8 }
 0x137   :  { %v382_v15 = vld [vmem:[#allocation3 + $0x11] sm:$0xff] }
 0x138   :  { %v381_v11 = vld [vmem:[#allocation3 + $0x1] sm:$0xff]  ;;  %v372_v16 = vld [vmem:[#allocation3 + $0x10] sm:$0xff] }
 0x139   :  { %v371_v12 = vld [vmem:[#allocation3] sm:$0xff]  ;;  %790 = vmatprep.mubr.msk.f32.mxu0 %vm368_vm3, %v381_v11  ;;  %v555_v23 = vld [vmem:[#allocation3 + $0x12] sm:$0xff] }
 0x13a   :  { %809 = vmatprep.mubr.msk.f32.mxu1 %vm368_vm3, %v371_v12  ;;  %791 = vmatmul.mubr.msk.f32.vlgmr.msra.gmra.mrb[2].mxu0 %vm368_vm3, %v382_v15  ;;  %v554_v18 = vld [vmem:[#allocation3 + $0x2] sm:$0xff] }
 0x13b   :  { %810 = vmatmul.mubr.msk.f32.vlgmr.msra.gmra.mrb[0].mxu1 %vm368_vm3, %v372_v16 }
 0x13c   :  { %890 = vmatpush3.bf16.msra.mxu1 %v887_v2  ;;  %828 = vmatprep.mubr.msk.f32.mxu1 %vm368_vm3, %v554_v18 }
 0x13d   :  { %892 = vmatprep.subr.bf16.mxu1 %v891_v13 }
 0x140   :  { %894 = vmatpush3.bf16.msra.mxu1 %v891_v13 }
 0x141   :  { %896 = vmatprep.subr.bf16.mxu1 %v895_v19 }
 0x144   :  { %898 = vmatpush3.bf16.msra.mxu1 %v895_v19 }
 0x145   :  { %900 = vmatprep.subr.bf16.mxu1 %v899_v22 }
 0x148   :  { %902 = vmatpush3.bf16.msra.mxu1 %v899_v22 }
 0x14b   :  { %829 = vmatmul.mubr.msk.f32.vlgmr.msra.gmra.mrb[0].mxu1 %vm368_vm3, %v555_v23 }
 0x20d   :  { %v792_v24 = vpop.f32.mrb[2].mxu0 }
 0x20e   :  { %v464_v25 = vpop.f32.mrb[3].mxu0 }
 0x21e   :  { %v830_v26 = vpop.f32.mrb[0].mxu1 }
 0x21f   :  { %v903_v28 = vadd.f32 %v830_v26, %v792_v24  ;;  %v637_v29 = vpop.f32.mrb[1].mxu1 }
 0x220   :  { %v904_v30 = vadd.f32 %v637_v29, %v464_v25 }
 0x221   :  { %v656_v31 = vadd.f32 %v903_v28, %v692_v27 }
 0x222   :  { %v655_v32 = vadd.f32 %v904_v30, %v692_v27 }
 0x223   :  { %v658_v33 = vmax.f32 %v656_v31, 0.0 }
 0x224   :  { %v657_v34 = vmax.f32 %v655_v32, 0.0 }
 0x225   :  { %660 = vst.msk [vmem:[#allocation10 + $0x8] sm:$0xff] %vm368_vm3, %v658_v33 }
 0x226   :  { %659 = vst.msk [vmem:[#allocation10] sm:$0xff] %vm368_vm3, %v657_v34 }
 0x227   :  { %995 = shalt.err (!%p992_p0)
}
 0x228   :  { %s996_s12 = scalar_lea.hbm %s1153_s5, 256 }
 0x229   :  { %p997_p1 = scmp.ne.s32.totalorder %s1153_s5, %s996_s12  ;;  %p1000_p2 = scmp.lt.u32.totalorder %s996_s12, %s1153_s5 }
 0x22b   :  { %p1002_p3 = pnand %p1000_p2, %p997_p1 }
 0x22d   :  { %1005 = shalt.err (!%p1002_p3)
}
 0x22e   :  { %672 = dma.vmem_to_hbm [thread:$0]  %s667_s9, 256, %s1153_s5, [#allocation6], %s1014_s30, %s1014_s30, %s1015_s6  }
 0x22f   :  { %1010 = dma.done.wait [#allocation6], 256  }
 0x230   :  { %1011 = vsyncadd [#allocation6], 4294967040 }
 0x231   :  { %676 = vsyncpa [#allocation5], 1 }
 0x232   :  { %677 = vsyncpa [#allocation8], 1 }
 0x233   :  { %678 = vsyncpa [#allocation6], 1 }

</bundles_post_ra>
